<compile_context>
chip_gen: v5e
topology: v5e:2x2
jax: 0.10.0
libtpu: 0.0.40
codegen_flags: <defaults>
</compile_context>

<pallas_src>
import functools

import jax
import jax.numpy as jnp
from jax import lax
from jax.experimental import pallas as pl
from jax.experimental.pallas import tpu as pltpu


def _round_up(v, m):
    return ((v + m - 1) // m) * m


def _vmem_capacity_bytes():
    """Physical VMEM per TensorCore; conservative v7x value if query fails."""
    try:
        return int(pltpu.get_tpu_info().vmem_capacity_bytes)
    except Exception:
        return 64 * 1024 * 1024


def _gated_retention_resident_kernel(x_ref, w_ref, b_ref, o_ref):
    # x_ref: (tm, H) rows; w_ref: (H, H) resident weight; b_ref: (1, H)
    x = x_ref[...]
    z = lax.dot_general(
        x, w_ref[...],
        dimension_numbers=(((1,), (1,)), ((), ())),     # x @ W.T, f32 accumulate
        preferred_element_type=jnp.float32,
    ) + b_ref[...].astype(jnp.float32)
    gate = 0.5 * (jnp.tanh(0.5 * z) + 1.0)               # sigmoid, 1 EUP op/elem
    o_ref[...] = (gate * x.astype(jnp.float32)).astype(o_ref.dtype)


def _gated_retention_ntiled_kernel(x_ref, w_ref, b_ref, o_ref, *, tn):
    # Fallback when W is too large to be VMEM-resident.
    # x_ref: (tm, Hp) full hidden rows; w_ref: (tn, Hp); b_ref: (1, tn)
    n = pl.program_id(0)                                  # output-column tile
    x = x_ref[...]
    z = lax.dot_general(
        x, w_ref[...],
        dimension_numbers=(((1,), (1,)), ((), ())),
        preferred_element_type=jnp.float32,
    ) + b_ref[...].astype(jnp.float32)
    gate = 0.5 * (jnp.tanh(0.5 * z) + 1.0)
    # Gate columns sliced from the already-loaded full-H tile (no 2nd x stream).
    col0 = pl.multiple_of(n * tn, 128)
    xg = x_ref[:, pl.ds(col0, tn)]
    o_ref[...] = (gate * xg.astype(jnp.float32)).astype(o_ref.dtype)


def gated_retention(x, weight, bias):
    """x: (..., H); weight: (H, H); bias: (H,). Returns sigmoid(x @ W.T + b) * x."""
    orig_shape = x.shape
    H = orig_shape[-1]
    M = 1
    for d in orig_shape[:-1]:
        M *= d
    x2d = x.reshape(M, H)
    b2d = bias.reshape(1, H)

    itemsize = jnp.dtype(x.dtype).itemsize
    w_itemsize = jnp.dtype(weight.dtype).itemsize
    row_pack = max(8, 32 // itemsize)                     # sublane pack per dtype

    vmem = _vmem_capacity_bytes()
    budget = max(32 * 1024 * 1024, min(int(vmem * 0.7), 100 * 1024 * 1024))
    tm_target = 512 if vmem >= 100 * 1024 * 1024 else 256  # bigger tiles on v5e/v6e

    # ---------------- resident-weight fast path --------------------------------
    def resident_bytes(tm):
        return (2 * H * H * w_itemsize          # weight (double-buffered block)
                + 2 * tm * H * itemsize         # x tile  x2
                + 2 * tm * H * itemsize         # out tile x2
                + 2 * H * 4)                    # bias

    tm_eff = None
    for cand in (tm_target, 256, 128):
        t = max(row_pack, min(_round_up(cand, row_pack), _round_up(M, row_pack)))
        if resident_bytes(t) <= budget:
            tm_eff = t
            break

    if tm_eff is not None:
        n_m = pl.cdiv(M, tm_eff)
        cost = pl.CostEstimate(
            flops=2 * M * H * H,
            transcendentals=M * H,
            bytes_accessed=2 * M * H * itemsize + H * H * w_itemsize + H * 4,
        )
        out2d = pl.pallas_call(
            _gated_retention_resident_kernel,
            out_shape=jax.ShapeDtypeStruct((M, H), x.dtype),
            grid_spec=pltpu.PrefetchScalarGridSpec(
                num_scalar_prefetch=0,
                grid=(n_m,),
                in_specs=[
                    pl.BlockSpec((tm_eff, H), lambda m: (m, 0)),   # x rows
                    pl.BlockSpec((H, H), lambda m: (0, 0)),        # resident W
                    pl.BlockSpec((1, H), lambda m: (0, 0)),        # bias
                ],
                out_specs=pl.BlockSpec((tm_eff, H), lambda m: (m, 0)),
            ),
            compiler_params=pltpu.CompilerParams(
                dimension_semantics=("parallel",),
                vmem_limit_bytes=budget,
            ),
            cost_estimate=cost,
        )(x2d, weight, b2d)
        return out2d.reshape(orig_shape)

    # ---------------- fallback: W too big for VMEM -> N-tiled ------------------
    Hp = _round_up(H, 128)
    x_p = x2d if Hp == H else jnp.pad(x2d, ((0, 0), (0, Hp - H)))
    w_p = weight if Hp == H else jnp.pad(weight, ((0, Hp - H), (0, Hp - H)))
    b_p = (bias if Hp == H else jnp.pad(bias, ((0, Hp - H),))).reshape(1, Hp)

    tn = 512 if Hp % 512 == 0 else (256 if Hp % 256 == 0 else 128)
    tm_eff = max(row_pack, min(_round_up(tm_target, row_pack),
                               _round_up(M, row_pack)))

    def ntiled_bytes(tm, tn_):
        return 2 * (tm * Hp + tn_ * Hp + tm * tn_) * itemsize + 2 * Hp * 4

    while ntiled_bytes(tm_eff, tn) > budget and tn > 128 and Hp % (tn // 2) == 0:
        tn //= 2
    while ntiled_bytes(tm_eff, tn) > budget and tm_eff > 2 * row_pack:
        tm_eff = max(row_pack, _round_up(tm_eff // 2, row_pack))

    n_n = Hp // tn
    n_m = pl.cdiv(M, tm_eff)
    kernel = functools.partial(_gated_retention_ntiled_kernel, tn=tn)
    cost = pl.CostEstimate(
        flops=2 * M * Hp * Hp,
        transcendentals=M * Hp,
        bytes_accessed=(n_n * M * Hp + M * Hp) * itemsize
        + Hp * Hp * w_itemsize + Hp * 4,
    )
    out2d = pl.pallas_call(
        kernel,
        out_shape=jax.ShapeDtypeStruct((M, Hp), x.dtype),
        grid_spec=pltpu.PrefetchScalarGridSpec(
            num_scalar_prefetch=0,
            # N outer (weight tile DMA'd once, reused over all row tiles).
            grid=(n_n, n_m),
            in_specs=[
                pl.BlockSpec((tm_eff, Hp), lambda n, m: (m, 0)),   # x rows (full H)
                pl.BlockSpec((tn, Hp),     lambda n, m: (n, 0)),   # weight tile
                pl.BlockSpec((1, tn),      lambda n, m: (0, n)),   # bias tile
            ],
            out_specs=pl.BlockSpec((tm_eff, tn), lambda n, m: (m, n)),
        ),
        compiler_params=pltpu.CompilerParams(
            dimension_semantics=("parallel", "parallel"),
            vmem_limit_bytes=budget,
        ),
        cost_estimate=cost,
    )(x_p, w_p, b_p)
    return out2d[:, :H].reshape(orig_shape)


def _reference(x, weight, bias):
    z = jnp.einsum("bsh,oh->bso", x, weight, precision="highest") + bias
    return jax.nn.sigmoid(z) * x


if __name__ == "__main__":
    B, S, H = 2, 8, 32
    key = jax.random.PRNGKey(0)
    kx, kw, kb = jax.random.split(key, 3)

    x = jax.random.normal(kx, (B, S, H), dtype=jnp.float32)
    # nn.Linear default init: uniform(-1/sqrt(H), 1/sqrt(H))
    bound = 1.0 / (H ** 0.5)
    weight = jax.random.uniform(kw, (H, H), minval=-bound, maxval=bound,
                                dtype=jnp.float32)
    bias = jax.random.uniform(kb, (H,), minval=-bound, maxval=bound,
                              dtype=jnp.float32)

    out = gated_retention(x, weight, bias)
    jax.block_until_ready(out)

    ref = _reference(x, weight, bias)
    assert out.shape == ref.shape
    assert jnp.allclose(out, ref, atol=1e-4, rtol=1e-4), "mismatch vs reference"
    print("KERNEL_OK")
</pallas_src>

<mosaic_0001>
module attributes {stable_mosaic.version = 11 : i64} {
  func.func @_gated_retention_resident_kernel(%arg0: i32, %arg1: memref<16x32xf32, #tpu.memory_space<vmem>>, %arg2: memref<32x32xf32, #tpu.memory_space<vmem>>, %arg3: memref<1x32xf32, #tpu.memory_space<vmem>>, %arg4: memref<16x32xf32, #tpu.memory_space<vmem>>) attributes {dimension_semantics = [#tpu.dimension_semantics<parallel>], iteration_bounds = array<i64: 1>, scalar_prefetch = 0 : i64, scratch_operands = 0 : i64, tpu.core_type = #tpu.core_type<tc>, window_params = [{transform_indices = @transform_0, window_bounds = array<i64: 16, 32>}, {pipeline_mode = #tpu.pipeline_mode<synchronous>, transform_indices = @transform_1, window_bounds = array<i64: 32, 32>}, {pipeline_mode = #tpu.pipeline_mode<synchronous>, transform_indices = @transform_2, window_bounds = array<i64: 1, 32>}, {transform_indices = @transform_3, window_bounds = array<i64: 16, 32>}]} {
    %c0 = arith.constant 0 : index
    %c0_0 = arith.constant 0 : index
    %0 = vector.load %arg1[%c0, %c0_0] : memref<16x32xf32, #tpu.memory_space<vmem>>, vector<16x32xf32>
    %c0_1 = arith.constant 0 : index
    %c0_2 = arith.constant 0 : index
    %1 = vector.load %arg2[%c0_1, %c0_2] : memref<32x32xf32, #tpu.memory_space<vmem>>, vector<32x32xf32>
    %cst = arith.constant dense<0.000000e+00> : vector<16x32xf32>
    %2 = tpu.matmul %0, %1, %cst {dimension_numbers = #tpu.dot_dimension_numbers<[1], [1], [0], [0], [0, 0, 1, 0], [], []>} : vector<16x32xf32>, vector<32x32xf32>, vector<16x32xf32> -> vector<16x32xf32>
    %c0_3 = arith.constant 0 : index
    %c0_4 = arith.constant 0 : index
    %3 = vector.load %arg3[%c0_3, %c0_4] : memref<1x32xf32, #tpu.memory_space<vmem>>, vector<1x32xf32>
    %4 = vector.broadcast %3 : vector<1x32xf32> to vector<16x32xf32>
    %5 = arith.addf %2, %4 : vector<16x32xf32>
    %cst_5 = arith.constant 5.000000e-01 : f32
    %6 = vector.broadcast %cst_5 : f32 to vector<16x32xf32>
    %7 = arith.mulf %6, %5 : vector<16x32xf32>
    %8 = math.tanh %7 : vector<16x32xf32>
    %cst_6 = arith.constant 1.000000e+00 : f32
    %9 = vector.broadcast %cst_6 : f32 to vector<16x32xf32>
    %10 = arith.addf %8, %9 : vector<16x32xf32>
    %cst_7 = arith.constant 5.000000e-01 : f32
    %11 = vector.broadcast %cst_7 : f32 to vector<16x32xf32>
    %12 = arith.mulf %11, %10 : vector<16x32xf32>
    %13 = arith.mulf %12, %0 : vector<16x32xf32>
    %c0_8 = arith.constant 0 : index
    %c0_9 = arith.constant 0 : index
    %14 = vector.load %arg4[%c0_8, %c0_9] : memref<16x32xf32, #tpu.memory_space<vmem>>, vector<16x32xf32>
    tpu.vector_store %arg4[%c0_8, %c0_9], %13 {strides = array<i32>} : memref<16x32xf32, #tpu.memory_space<vmem>>, vector<16x32xf32>,
    return
  }
  func.func @transform_0(%arg0: i32) -> (i32, i32) {
    %c0_i32 = arith.constant 0 : i32
    %c0_i32_0 = arith.constant 0 : i32
    return %arg0, %c0_i32 : i32, i32
  }
  func.func @transform_1(%arg0: i32) -> (i32, i32) {
    %c0_i32 = arith.constant 0 : i32
    %c0_i32_0 = arith.constant 0 : i32
    %c0_i32_1 = arith.constant 0 : i32
    return %c0_i32, %c0_i32_0 : i32, i32
  }
  func.func @transform_2(%arg0: i32) -> (i32, i32) {
    %c0_i32 = arith.constant 0 : i32
    %c0_i32_0 = arith.constant 0 : i32
    %c0_i32_1 = arith.constant 0 : i32
    return %c0_i32, %c0_i32_0 : i32, i32
  }
  func.func @transform_3(%arg0: i32) -> (i32, i32) {
    %c0_i32 = arith.constant 0 : i32
    %c0_i32_0 = arith.constant 0 : i32
    return %arg0, %c0_i32 : i32, i32
  }
}

</mosaic_0001>

<bundles_post_ra>
// kernel: tpu_custom_call.1
= control target key start
LH: loop header
LB: loop body
LE: loop exit
PB: predicated region body
PF: predicated region fallthrough
CT: control target
= control target key end

     0   :  { %8 = vsyncpa [#allocation3], 0  ;;  %s287_s0 = inlined_call_operand.hbm [shape: f32[16,32], index: 0, kind: input, shape index: {}]   ;;  %s288_s1 = inlined_call_operand.hbm [shape: f32[32,32], index: 1, kind: input, shape index: {}]   ;;  %s289_s2 = inlined_call_operand.vmem [shape: f32[1,32], index: 2, kind: input, shape index: {}]   ;;  %s290_s3 = inlined_call_operand.hbm [shape: f32[16,32], index: 3, kind: output, shape index: {}]  }
   0x1   :  { %9 = vsyncpa [#allocation6], 0 }
   0x2   :  { %10 = vsyncpa [#allocation4], 0  ;;  %s15_s14 = sshll.u32 %s287_s0, 4  ;;  %s229_s15 = smov [#allocation2]   ;;  %s16_s14 = int_to_ptr.hbm [resolvable:$true] %s15_s14 }
   0x3   :  { %s17_s16 = sshll.u32 %s229_s15, 4  ;;  %s28_s19 = sshll.u32 %s288_s1, 4  ;;  %s18_s16 = int_to_ptr.vmem [resolvable:$true] %s17_s16  ;;  %s29_s19 = int_to_ptr.hbm [resolvable:$true] %s28_s19 }
   0x4   :  { %s230_s20 = smov 128   ;;  %s231_s21 = smov 8  }
   0x5   :  { %23 = dma.hbm_to_vmem [thread:$0]  %s16_s14, 256, %s18_s16, [#allocation3], %s230_s20, %s230_s20, %s231_s21  }
   0x6   :  { %s232_s22 = smov [#allocation5]  }
   0x7   :  { %s30_s23 = sshll.u32 %s232_s22, 4  ;;  %s31_s23 = int_to_ptr.vmem [resolvable:$true] %s30_s23 }
   0x8   :  { %36 = dma.hbm_to_vmem [thread:$0]  %s29_s19, 512, %s31_s23, [#allocation6], %s230_s20, %s230_s20, %s231_s21  }
   0x9   :  { %223 = dma.done.wait [#allocation3], 256  }
   0xa   :  { %224 = vsyncadd [#allocation3], 4294967040 }
   0xb   :  { %225 = dma.done.wait [#allocation6], 512  }
   0xc   :  { %226 = vsyncadd [#allocation6], 4294966784  ;;  %vm57_vm0 = vcmask 261120   ;;  %v52_v0 = vld [vmem:[#allocation5 + $0x18] sm:$0xff]  ;;  %v51_v1 = vld [vmem:[#allocation5 + $0x10] sm:$0xff]  ;;  %s233_s24 = smov [#allocation7]  }
   0xd   :  { %131 = vmatpush.xpose.msk.msra.mxu0 %vm57_vm0, %v52_v0  ;;  %137 = vmatpush.xpose.msk.msra.mxu1 %vm57_vm0, %v52_v0  ;;  %v50_v2 = vld [vmem:[#allocation5 + $0x8] sm:$0xff]  ;;  %v49_v3 = vld [vmem:[#allocation5] sm:$0xff]  ;;  %v47_v4 = vld [vmem:[#allocation2] sm:$0xff]  ;;  %s115_s25 = sshll.u32 %s233_s24, 4  ;;  %s117_s28 = sshll.u32 %s290_s3, 4  ;;  %s116_s25 = int_to_ptr.vmem [resolvable:$true] %s115_s25  ;;  %s118_s28 = int_to_ptr.hbm [resolvable:$true] %s117_s28 }
   0xe   :  { %v48_v5 = vld [vmem:[#allocation2 + $0x8] sm:$0xff]  ;;  %v146_v6 = vld [vmem:[%s289_s2] ss:$0 sm:$0xff] }
  0x11   :  { %132 = vmatpush.xpose.msk.msra.mxu0 %vm57_vm0, %v51_v1  ;;  %138 = vmatpush.xpose.msk.msra.mxu1 %vm57_vm0, %v51_v1 }
  0x15   :  { %133 = vmatpush.xpose.msk.msra.mxu0 %vm57_vm0, %v50_v2  ;;  %139 = vmatpush.xpose.msk.msra.mxu1 %vm57_vm0, %v50_v2 }
  0x19   :  { %134 = vmatpush.xpose.msk.msra.mxu0 %vm57_vm0, %v49_v3  ;;  %140 = vmatpush.xpose.msk.msra.mxu1 %vm57_vm0, %v49_v3 }
  0x1c   :  { %135 = vmatmul.msk.f32.vlgmr.msra.gmra.mxu0 %vm57_vm0, %v47_v4  ;;  %136 = vmatmul.msk.f32.vlgmr.msra.gmra.mxu1 %vm57_vm0, %v48_v5 }
  0x99   :  { %v93_v7 = vpop.f32.mrf.mxu0  ;;  %v96_v8 = vpop.f32.mrf.mxu1 }
  0x9a   :  { %v94_v9 = vadd.f32 %v146_v6, %v93_v7  ;;  %v97_v10 = vadd.f32 %v146_v6, %v96_v8 }
  0x9c   :  { %v99_v11 = vmul.f32 0.5, %v94_v9  ;;  %v100_v12 = vmul.f32 0.5, %v97_v10 }
  0x9e   :  { %147 = vtanh.f32 %v99_v11 }
  0x9f   :  { %149 = vtanh.f32 %v100_v12 }
  0xa4   :  { %v148_v13 = vpop.eup %147 }
  0xa5   :  { %v150_v14 = vpop.eup %149  ;;  %v103_v15 = vadd.f32 1.0, %v148_v13 }
  0xa6   :  { %v104_v16 = vadd.f32 1.0, %v150_v14 }
  0xa7   :  { %v105_v17 = vmul.f32 0.5, %v103_v15 }
  0xa8   :  { %v106_v18 = vmul.f32 0.5, %v104_v16 }
  0xa9   :  { %v107_v19 = vmul.f32 %v105_v17, %v47_v4 }
  0xaa   :  { %v108_v20 = vmul.f32 %v106_v18, %v48_v5 }
  0xab   :  { %109 = vst.msk [vmem:[#allocation7] sm:$0xff] %vm57_vm0, %v107_v19 }
  0xac   :  { %110 = vst.msk [vmem:[#allocation7 + $0x8] sm:$0xff] %vm57_vm0, %v108_v20 }
  0xad   :  { %123 = dma.vmem_to_hbm [thread:$0]  %s116_s25, 256, %s118_s28, [#allocation4], %s230_s20, %s230_s20, %s231_s21  }
  0xae   :  { %227 = dma.done.wait [#allocation4], 256  }
  0xaf   :  { %228 = vsyncadd [#allocation4], 4294967040 }
  0xb0   :  { %128 = vsyncpa [#allocation3], 1 }
  0xb1   :  { %129 = vsyncpa [#allocation6], 1 }
  0xb2   :  { %130 = vsyncpa [#allocation4], 1 }

</bundles_post_ra>
